<compile_context>
chip_gen: v7x
topology: tpu7x:2x2x1
jax: 0.10.0
libtpu: 0.0.40
codegen_flags: <defaults>
</compile_context>

<pallas_src>
import jax
import jax.numpy as jnp
from jax import lax
from jax.experimental import pallas as pl
from jax.experimental.pallas import tpu as pltpu


def _batch_loss_kernel(stu_ref, tch_ref, out_ref, sim_s_acc, sim_t_acc):
    # stu_ref / tch_ref: (N, tk) chunk in VMEM (native dtype).
    # out_ref: (1, 1) f32 in SMEM.  sim_*_acc: (N, N) f32 VMEM accumulators.
    k = pl.program_id(0)

    @pl.when(k == 0)
    def _init():
        sim_s_acc[...] = jnp.zeros_like(sim_s_acc)
        sim_t_acc[...] = jnp.zeros_like(sim_t_acc)

    fs = stu_ref[...]
    ft = tch_ref[...]
    # A @ A.T: contract the feature axis (dim 1) of both operands. f32 accumulate.
    dn = (((1,), (1,)), ((), ()))
    sim_s_acc[...] += lax.dot_general(fs, fs, dn, preferred_element_type=jnp.float32)
    sim_t_acc[...] += lax.dot_general(ft, ft, dn, preferred_element_type=jnp.float32)

    @pl.when(k == pl.num_programs(0) - 1)
    def _finalize():
        sim_s = sim_s_acc[...]
        sim_t = sim_t_acc[...]
        # torch.norm(sim, 2, 1).view(-1, 1): per-row L2 norm, then divide.
        # rsqrt (EUP) fused with a VPU multiply instead of sqrt + divide.
        inv_s = lax.rsqrt(jnp.sum(sim_s * sim_s, axis=1, keepdims=True))
        inv_t = lax.rsqrt(jnp.sum(sim_t * sim_t, axis=1, keepdims=True))
        diff = sim_s * inv_s - sim_t * inv_t
        n = jnp.float32(sim_s.shape[0])
        out_ref[0, 0] = jnp.sum(diff * diff) / n


def _pick_tile_k(n_rows, d_pad, itemsize):
    """Largest lane-aligned tile width whose pipeline footprint fits a
    conservative VMEM budget (safe on v7x's 64 MiB; v5e/v6e have headroom)."""
    budget = 24 * 1024 * 1024 - 2 * n_rows * n_rows * 4  # minus the 2 accumulators
    tk = 2048
    # 2 inputs x 2 pipeline buffers x (N x tk x itemsize)
    while tk > 128 and 4 * n_rows * tk * itemsize > budget:
        tk //= 2
    return min(tk, d_pad)


def batch_loss(features_stu, features_tch, batch_size, world_size=1, tile_k=None):
    assert features_stu.shape == features_tch.shape
    N = batch_size * world_size
    assert features_stu.shape[0] == N, "world_size > 1 gather not modeled here"
    # TODO(synk): GatherLayer (distributed all-gather) for world_size > 1 is not
    # modeled; the single-device case is the identity.

    # Flatten to (N, D) exactly like torch .view(N, -1).
    fs = features_stu.reshape(N, -1)
    ft = features_tch.reshape(N, -1)
    D = fs.shape[1]
    itemsize = jnp.dtype(fs.dtype).itemsize

    # Lane-align D and pick the tile width along D.  Zero-padding extra feature
    # columns does not change F @ F.T, so the result is exact.
    d_align = ((D + 127) // 128) * 128
    tk = tile_k if tile_k is not None else _pick_tile_k(N, d_align, itemsize)
    tk = max(128, min(tk, d_align))
    d_pad = pl.cdiv(d_align, tk) * tk
    if d_pad != D:
        fs = jnp.pad(fs, ((0, 0), (0, d_pad - D)))
        ft = jnp.pad(ft, ((0, 0), (0, d_pad - D)))

    grid = (d_pad // tk,)

    cost = pl.CostEstimate(
        flops=4 * N * N * d_pad,          # two Gram matmuls: 2 * (2*N*N*D)
        transcendentals=2 * N,            # two rsqrt columns
        bytes_accessed=2 * N * d_pad * itemsize + 4,
    )

    out = pl.pallas_call(
        _batch_loss_kernel,
        out_shape=jax.ShapeDtypeStruct((1, 1), jnp.float32),
        grid=grid,
        in_specs=[
            pl.BlockSpec((N, tk), lambda k: (0, k)),
            pl.BlockSpec((N, tk), lambda k: (0, k)),
        ],
        out_specs=pl.BlockSpec(
            (1, 1), lambda k: (0, 0), memory_space=pltpu.MemorySpace.SMEM
        ),
        scratch_shapes=[
            pltpu.VMEM((N, N), jnp.float32),
            pltpu.VMEM((N, N), jnp.float32),
        ],
        compiler_params=pltpu.CompilerParams(
            dimension_semantics=("arbitrary",),   # reduction axis over D chunks
            vmem_limit_bytes=32 * 1024 * 1024,    # tiles sized to fit v7x too
        ),
        cost_estimate=cost,
    )(fs, ft)
    return out[0, 0]


def _reference_batch_loss(features_stu, features_tch, batch_size, world_size=1):
    N = batch_size * world_size
    fs = features_stu.reshape(N, -1).astype(jnp.float32)
    ft = features_tch.reshape(N, -1).astype(jnp.float32)
    sim_s = fs @ fs.T
    sim_s = sim_s / jnp.linalg.norm(sim_s, axis=1, keepdims=True)
    sim_t = ft @ ft.T
    sim_t = sim_t / jnp.linalg.norm(sim_t, axis=1, keepdims=True)
    return jnp.sum((sim_s - sim_t) ** 2 / N)


if __name__ == "__main__":
    batch_size, world_size = 8, 1
    C, H, W = 4, 16, 16  # D = 1024 (lane-aligned)

    key = jax.random.PRNGKey(0)
    k1, k2 = jax.random.split(key)
    features_stu = jax.random.normal(
        k1, (batch_size * world_size, C, H, W), dtype=jnp.float32
    )
    features_tch = jax.random.normal(
        k2, (batch_size * world_size, C, H, W), dtype=jnp.float32
    )

    ref = _reference_batch_loss(features_stu, features_tch, batch_size, world_size)

    # Multi-step grid path: D=1024, tk=256 -> 4 accumulation steps.
    loss_multi = batch_loss(
        features_stu, features_tch, batch_size, world_size, tile_k=256
    )
    loss_multi = jax.block_until_ready(loss_multi)
    assert jnp.allclose(loss_multi, ref, rtol=1e-5, atol=1e-5), (loss_multi, ref)

    # Default (auto) tile path: single grid step covering all of D.
    loss_auto = batch_loss(features_stu, features_tch, batch_size, world_size)
    loss_auto = jax.block_until_ready(loss_auto)
    assert jnp.allclose(loss_auto, ref, rtol=1e-5, atol=1e-5), (loss_auto, ref)

    print("KERNEL_OK")
</pallas_src>

<mosaic_0001>
module attributes {stable_mosaic.version = 11 : i64} {
  func.func @_batch_loss_kernel(%arg0: i32, %arg1: memref<8x256xf32, #tpu.memory_space<vmem>>, %arg2: memref<8x256xf32, #tpu.memory_space<vmem>>, %arg3: memref<1x1xf32, #tpu.memory_space<smem>>, %arg4: memref<8x8xf32, #tpu.memory_space<vmem>>, %arg5: memref<8x8xf32, #tpu.memory_space<vmem>>) attributes {dimension_semantics = [#tpu.dimension_semantics<arbitrary>], iteration_bounds = array<i64: 4>, scalar_prefetch = 0 : i64, scratch_operands = 2 : i64, tpu.core_type = #tpu.core_type<tc>, window_params = [{transform_indices = @transform_0, window_bounds = array<i64: 8, 256>}, {transform_indices = @transform_1, window_bounds = array<i64: 8, 256>}, {transform_indices = @transform_2, window_bounds = array<i64: 1, 1>}]} {
    %c0_i32 = arith.constant 0 : i32
    %0 = arith.cmpi eq, %arg0, %c0_i32 : i32
    %1 = arith.extui %0 : i1 to i32
    %c0_i32_0 = arith.constant 0 : i32
    %2 = arith.cmpi ne, %1, %c0_i32_0 : i32
    scf.if %2 {
      %cst_14 = arith.constant 0.000000e+00 : f32
      %16 = vector.broadcast %cst_14 : f32 to vector<8x8xf32>
      %c0_15 = arith.constant 0 : index
      %c0_16 = arith.constant 0 : index
      %17 = vector.load %arg4[%c0_15, %c0_16] : memref<8x8xf32, #tpu.memory_space<vmem>>, vector<8x8xf32>
      tpu.vector_store %arg4[%c0_15, %c0_16], %16 {strides = array<i32>} : memref<8x8xf32, #tpu.memory_space<vmem>>, vector<8x8xf32>,
      %cst_17 = arith.constant 0.000000e+00 : f32
      %18 = vector.broadcast %cst_17 : f32 to vector<8x8xf32>
      %c0_18 = arith.constant 0 : index
      %c0_19 = arith.constant 0 : index
      %19 = vector.load %arg5[%c0_18, %c0_19] : memref<8x8xf32, #tpu.memory_space<vmem>>, vector<8x8xf32>
      tpu.vector_store %arg5[%c0_18, %c0_19], %18 {strides = array<i32>} : memref<8x8xf32, #tpu.memory_space<vmem>>, vector<8x8xf32>,
    } else {
    }
    %c0 = arith.constant 0 : index
    %c0_1 = arith.constant 0 : index
    %3 = vector.load %arg1[%c0, %c0_1] : memref<8x256xf32, #tpu.memory_space<vmem>>, vector<8x256xf32>
    %c0_2 = arith.constant 0 : index
    %c0_3 = arith.constant 0 : index
    %4 = vector.load %arg2[%c0_2, %c0_3] : memref<8x256xf32, #tpu.memory_space<vmem>>, vector<8x256xf32>
    %c0_4 = arith.constant 0 : index
    %c0_5 = arith.constant 0 : index
    %5 = vector.load %arg4[%c0_4, %c0_5] : memref<8x8xf32, #tpu.memory_space<vmem>>, vector<8x8xf32>
    %cst = arith.constant dense<0.000000e+00> : vector<8x8xf32>
    %6 = tpu.matmul %3, %3, %cst {dimension_numbers = #tpu.dot_dimension_numbers<[1], [1], [0], [0], [0, 0, 1, 0], [], []>} : vector<8x256xf32>, vector<8x256xf32>, vector<8x8xf32> -> vector<8x8xf32>
    %7 = arith.addf %5, %6 : vector<8x8xf32>
    %c0_6 = arith.constant 0 : index
    %c0_7 = arith.constant 0 : index
    %8 = vector.load %arg4[%c0_6, %c0_7] : memref<8x8xf32, #tpu.memory_space<vmem>>, vector<8x8xf32>
    tpu.vector_store %arg4[%c0_6, %c0_7], %7 {strides = array<i32>} : memref<8x8xf32, #tpu.memory_space<vmem>>, vector<8x8xf32>,
    %c0_8 = arith.constant 0 : index
    %c0_9 = arith.constant 0 : index
    %9 = vector.load %arg5[%c0_8, %c0_9] : memref<8x8xf32, #tpu.memory_space<vmem>>, vector<8x8xf32>
    %cst_10 = arith.constant dense<0.000000e+00> : vector<8x8xf32>
    %10 = tpu.matmul %4, %4, %cst_10 {dimension_numbers = #tpu.dot_dimension_numbers<[1], [1], [0], [0], [0, 0, 1, 0], [], []>} : vector<8x256xf32>, vector<8x256xf32>, vector<8x8xf32> -> vector<8x8xf32>
    %11 = arith.addf %9, %10 : vector<8x8xf32>
    %c0_11 = arith.constant 0 : index
    %c0_12 = arith.constant 0 : index
    %12 = vector.load %arg5[%c0_11, %c0_12] : memref<8x8xf32, #tpu.memory_space<vmem>>, vector<8x8xf32>
    tpu.vector_store %arg5[%c0_11, %c0_12], %11 {strides = array<i32>} : memref<8x8xf32, #tpu.memory_space<vmem>>, vector<8x8xf32>,
    %c3_i32 = arith.constant 3 : i32
    %13 = arith.cmpi eq, %arg0, %c3_i32 : i32
    %14 = arith.extui %13 : i1 to i32
    %c0_i32_13 = arith.constant 0 : i32
    %15 = arith.cmpi ne, %14, %c0_i32_13 : i32
    scf.if %15 {
      %c0_14 = arith.constant 0 : index
      %c0_15 = arith.constant 0 : index
      %16 = vector.load %arg4[%c0_14, %c0_15] : memref<8x8xf32, #tpu.memory_space<vmem>>, vector<8x8xf32>
      %c0_16 = arith.constant 0 : index
      %c0_17 = arith.constant 0 : index
      %17 = vector.load %arg5[%c0_16, %c0_17] : memref<8x8xf32, #tpu.memory_space<vmem>>, vector<8x8xf32>
      %18 = arith.mulf %16, %16 : vector<8x8xf32>
      %cst_18 = arith.constant dense<0.000000e+00> : vector<8xf32>
      %19 = vector.multi_reduction <add>, %18, %cst_18 [1] : vector<8x8xf32> to vector<8xf32>
      %20 = vector.shape_cast %19 : vector<8xf32> to vector<8x1xf32>
      %21 = math.rsqrt %20 : vector<8x1xf32>
      %22 = arith.mulf %17, %17 : vector<8x8xf32>
      %cst_19 = arith.constant dense<0.000000e+00> : vector<8xf32>
      %23 = vector.multi_reduction <add>, %22, %cst_19 [1] : vector<8x8xf32> to vector<8xf32>
      %24 = vector.shape_cast %23 : vector<8xf32> to vector<8x1xf32>
      %25 = math.rsqrt %24 : vector<8x1xf32>
      %26 = vector.broadcast %21 : vector<8x1xf32> to vector<8x8xf32>
      %27 = arith.mulf %16, %26 : vector<8x8xf32>
      %28 = vector.broadcast %25 : vector<8x1xf32> to vector<8x8xf32>
      %29 = arith.mulf %17, %28 : vector<8x8xf32>
      %30 = arith.subf %27, %29 : vector<8x8xf32>
      %31 = arith.mulf %30, %30 : vector<8x8xf32>
      %32 = vector.shape_cast %31 : vector<8x8xf32> to vector<1x8x8xf32>
      %cst_20 = arith.constant dense<0.000000e+00> : vector<1xf32>
      %33 = vector.multi_reduction <add>, %32, %cst_20 [1, 2] : vector<1x8x8xf32> to vector<1xf32>
      %34 = vector.shape_cast %33 : vector<1xf32> to vector<1x1x1xf32>
      %35 = vector.extract %34[0, 0, 0] : f32 from vector<1x1x1xf32>
      %cst_21 = arith.constant 8.000000e+00 : f32
      %36 = arith.divf %35, %cst_21 : f32
      %c0_22 = arith.constant 0 : index
      %c0_23 = arith.constant 0 : index
      %37 = memref.load %arg3[%c0_22, %c0_23] : memref<1x1xf32, #tpu.memory_space<smem>>
      memref.store %36, %arg3[%c0_22, %c0_23] : memref<1x1xf32, #tpu.memory_space<smem>>
    } else {
    }
    return
  }
  func.func @transform_0(%arg0: i32) -> (i32, i32) {
    %c0_i32 = arith.constant 0 : i32
    %c0_i32_0 = arith.constant 0 : i32
    return %c0_i32, %arg0 : i32, i32
  }
  func.func @transform_1(%arg0: i32) -> (i32, i32) {
    %c0_i32 = arith.constant 0 : i32
    %c0_i32_0 = arith.constant 0 : i32
    return %c0_i32, %arg0 : i32, i32
  }
  func.func @transform_2(%arg0: i32) -> (i32, i32) {
    %c0_i32 = arith.constant 0 : i32
    %c0_i32_0 = arith.constant 0 : i32
    %c0_i32_1 = arith.constant 0 : i32
    return %c0_i32, %c0_i32_0 : i32, i32
  }
}

</mosaic_0001>

<bundles_post_ra>
// kernel: tpu_custom_call.1
= control target key start
LH: loop header
LB: loop body
LE: loop exit
PB: predicated region body
PF: predicated region fallthrough
CT: control target
= control target key end

     0   :  { %7 = vsyncpa [#allocation5], 0  ;;  %s842_s0 = inlined_call_operand.hbm [shape: f32[8,1024], index: 0, kind: input, shape index: {}]   ;;  %s843_s1 = inlined_call_operand.hbm [shape: f32[8,1024], index: 1, kind: input, shape index: {}]   ;;  %s844_s2 = inlined_call_operand.hbm [shape: f32[1,1], index: 2, kind: output, shape index: {}]  }
   0x1   :  { %9 = vsyncpa [#allocation5 + $0x1], 0 }
   0x2   :  { %10 = vsyncpa [#allocation8], 0 }
   0x3   :  { %12 = vsyncpa [#allocation8 + $0x1], 0 }
   0x4   :  { %13 = vsyncpa [#allocation6], 0  ;;  %s673_s9 = smov 0   ;;  %s675_s10 = smov 0  }
   0x5   :  { %s677_s11 = smov 0   ;;  %s679_s12 = smov 0  }
   0x6 LB: > { %s692_s13 = sadd.s32 4294967295, %s652_s12   ;;  %s695_s14 = sadd.s32 1, %s652_s12   ;;  %s652_s12 = sphi %s679_s12, %s856_s12   ;;  %s648_s11 = sphi %s677_s11, %s855_s11   ;;  %s644_s10 = sphi %s675_s10, %s854_s10   ;;  %s640_s9 = sphi %s673_s9, %s853_s9  }
   0x7   : > { %s23_s15 = ssub.s32 %s652_s12, %s695_s14  ;;  %s26_s16 = sadd.s32 1, %s648_s11 }
   0x8   : > { %p24_p0 = scmp.eq.s32.totalorder %s23_s15, 0  ;;  %p33_p1 = scmp.ne.s32.totalorder %s648_s11, %s644_s10 }
   0x9   : > { %p34_p2 = scmp.eq.s32.totalorder %s652_s12, 0  ;;  %p39_p3 = scmp.ne.s32.totalorder %s644_s10, %s640_s9 }
   0xa   : > { %s705_s17 = scalar_select %p24_p0, %s648_s11, %s26_s16  }
   0xb   : > { %p35_p4 = por %p34_p2, %p33_p1  ;;  %p40_p5 = scmp.eq.s32.totalorder %s692_s13, 0 }
   0xc   : > { %p497_p6 = scmp.lt.s32.totalorder %s652_s12, 4  ;;  %s714_s19 = sand.u32 1, %s648_s11  }
   0xd   : > { %p709_p7 = por %p40_p5, %p39_p3  ;;  %s463_s20 = sshll.u32 %s714_s19, 4 }
   0xe   : > { %s478_s21 = sshll.u32 %s652_s12, 8  ;;  %s114_s25 = scalar_lea.vmem [#allocation4], %s463_s20 }
   0xf   : > { %s846_s18 = scalar_select %p709_p7, 1, 0 }
  0x10   : > { %s723_s24 = scalar_lea.hbm %s842_s0, %s478_s21  ;;  %s122_s26 = sshll.u32 %s114_s25, 4  ;;  %s727_s26 = int_to_ptr.vmem [resolvable:$true] %s122_s26 }
  0x11   : > { %p729_p8 = pnand %p497_p6, %p35_p4  ;;  %s111_s28 = scalar_lea.sflag [#allocation5], %s714_s19 }
  0x12   : > { %s538_s29 = scalar_lea.hbm %s723_s24, 256  ;;  %s543_s4 = scalar_lea.hbm %s842_s0, 1024 }
  0x13   : > { %p539_p11 = scmp.ne.s32.totalorder %s723_s24, %s538_s29  ;;  %p540_p12 = pneg %p729_p8 }
  0x14   : > { %p544_p1 = scmp.lt.u32.totalorder %s723_s24, %s842_s0  ;;  %p545_p2 = scmp.lt.u32.totalorder %s543_s4, %s538_s29 }
  0x15   : > { %p541_p13 = pnand %p540_p12, %p539_p11  ;;  %p547_p4 = scmp.lt.u32.totalorder %s538_s29, %s723_s24 }
  0x16   : > { %p546_p3 = por %p545_p2, %p544_p1 }
  0x17   : > { %p542_p0 = pneg %p541_p13 }
  0x18   : > { %p548_p5 = por %p547_p4, %p546_p3 }
  0x1a   : > { %p549_p6 = pnand %p548_p5, %p542_p0 }
  0x1c   : > { %552 = shalt.err (!%p549_p6)
}
  0x1d   : > { %s553_s7 = scalar_lea.vmem %s727_s26, 256  ;;  %s654_s8 = smov [#allocation4]  }
  0x1e   : > { %p554_p11 = scmp.ne.s32.totalorder %s727_s26, %s553_s7  ;;  %s558_s9 = sshll.u32 %s654_s8, 4  ;;  %s559_s9 = int_to_ptr.vmem [resolvable:$false] %s558_s9 }
  0x1f   : > { %s560_s15 = scalar_lea.vmem %s559_s9, 512  ;;  %p561_p10 = scmp.lt.s32.totalorder %s727_s26, %s559_s9 }
  0x20   : > { %p556_p13 = pnand %p554_p11, %p540_p12  ;;  %p562_p1 = scmp.lt.s32.totalorder %s560_s15, %s553_s7 }
  0x22   : > { %p557_p9 = pneg %p556_p13  ;;  %p563_p2 = por %p562_p1, %p561_p10 }
  0x24   : > { %p564_p3 = pnand %p563_p2, %p557_p9 }
  0x26   : > { %567 = shalt.err (!%p564_p3)
}
  0x27   : > { %493 = dma.hbm_to_vmem [thread:$0]  (!%p729_p8), %s723_s24, 256, %s727_s26, %s111_s28  }
  0x28   : > { %p848_p0 = scmp.lt.s32.totalorder %s652_s12, 5  ;;  %p849_p4 = scmp.ge.s32.totalorder %s652_s12, 1 }
  0x29   : > { %s774_s25 = scalar_lea.hbm %s843_s1, %s478_s21  ;;  %s133_s29 = scalar_lea.vmem [#allocation7], %s463_s20 }
  0x2a   : > { %p765_p5 = pnand %p849_p4, %p848_p0  ;;  %s141_s30 = sshll.u32 %s133_s29, 4  ;;  %s142_s30 = int_to_ptr.vmem [resolvable:$true] %s141_s30 }
  0x2b   : > { %s130_s24 = scalar_lea.sflag [#allocation8], %s714_s19  ;;  %s568_s26 = scalar_lea.hbm %s774_s25, 256 }
  0x2c   : > { %s850_s16 = scalar_select %p765_p5, 1, 0 }
  0x2d   : > { %p569_p9 = scmp.ne.s32.totalorder %s774_s25, %s568_s26  ;;  %s573_s21 = scalar_lea.hbm %s843_s1, 1024 }
  0x2e   : > { %p574_p11 = scmp.lt.u32.totalorder %s774_s25, %s843_s1  ;;  %p575_p13 = scmp.lt.u32.totalorder %s573_s21, %s568_s26 }
  0x2f   : > { %p571_p10 = pnand %p569_p9, %p540_p12  ;;  %p577_p2 = scmp.lt.u32.totalorder %s568_s26, %s774_s25 }
  0x30   : > { %p576_p1 = por %p575_p13, %p574_p11 }
  0x31   : > { %p572_p6 = pneg %p571_p10 }
  0x32   : > { %p578_p3 = por %p577_p2, %p576_p1 }
  0x34   : > { %p579_p0 = pnand %p578_p3, %p572_p6 }
  0x36   : > { %582 = shalt.err (!%p579_p0)
}
  0x37   : > { %s583_s19 = scalar_lea.vmem %s142_s30, 256  ;;  %s655_s20 = smov [#allocation7]  }
  0x38   : > { %p584_p4 = scmp.ne.s32.totalorder %s142_s30, %s583_s19  ;;  %s588_s5 = sshll.u32 %s655_s20, 4  ;;  %s589_s5 = int_to_ptr.vmem [resolvable:$false] %s588_s5 }
  0x39   : > { %s590_s6 = scalar_lea.vmem %s589_s5, 512  ;;  %p591_p7 = scmp.lt.s32.totalorder %s142_s30, %s589_s5 }
  0x3a   : > { %p586_p9 = pnand %p584_p4, %p540_p12  ;;  %p592_p5 = scmp.lt.s32.totalorder %s590_s6, %s583_s19 }
  0x3c   : > { %p587_p10 = pneg %p586_p9  ;;  %p593_p11 = por %p592_p5, %p591_p7 }
  0x3e   : > { %p594_p13 = pnand %p593_p11, %p587_p10 }
  0x40   : > { %597 = shalt.err (!%p594_p13)
}
  0x41   : > { %496 = dma.hbm_to_vmem [thread:$0]  (!%p729_p8), %s774_s25, 256, %s142_s30, %s130_s24  }
  0x42   : > { %p851_p6 = scmp.ne.s32.totalorder %s850_s16, 0 }
  0x43   : > { %s152_s7 = sand.u32 (!%p851_p6), 1, %s644_s10   ;;  %p852_p12 = scmp.ne.s32.totalorder (!%p851_p6), %s846_s18, 0 }
  0x44   : > { %150 = sbr.rel (%p851_p6) target bundleno = 703 (0x2bf), region = 28  ;;  %s470_s8 = sshll.u32 (!%p851_p6), %s152_s7, 4 }
  0x45   : > { %s153_s9 = scalar_lea.sflag (!%p851_p6), [#allocation5], %s152_s7  ;;  %s156_s15 = scalar_lea.vmem (!%p851_p6), [#allocation4], %s470_s8 }
  0x4b   : > { %627 = dma.done.wait (%p852_p12), %s153_s9, 256  }
  0x4c   : > { %629 = vsyncadd (%p852_p12), %s153_s9, 4294967040  ;;  %s162_s22 = scalar_lea.sflag [#allocation8], %s152_s7  ;;  %s165_s23 = scalar_lea.vmem [#allocation7], %s470_s8 }
  0x4d   : > { %631 = dma.done.wait (%p852_p12), %s162_s22, 256  }
  0x4e   : > { %633 = vsyncadd (%p852_p12), %s162_s22, 4294967040  ;;  %p472_p7 = scmp.ne.s32.totalorder %s692_s13, 0 }
  0x4f   : > { %vm192_vm0 = vcmask (!%p472_p7), 64512   ;;  %v656_v0 = vmov (!%p472_p7), 0.0  }
  0x50   : > { %191 = sbr.rel (%p472_p7) target bundleno = 87 (0x57), region = 40  ;;  %193 = vst.msk [vmem:[#allocation2] sm:$0xff] (!%p472_p7), %vm192_vm0, %v656_v0  ;;  %194 = vst.msk [vmem:[#allocation3] sm:$0xff] (!%p472_p7), %vm192_vm0, %v656_v0 }
  0x57 PF: > { %v196_v1 = vld [vmem:[%s156_s15 + $0x8] sm:$0xff]  ;;  %v195_v3 = vld [vmem:[%s156_s15] sm:$0xff]  ;;  %vm271_vm1 = vcmask 64512   ;;  %p473_p8 = scmp.ne.s32.totalorder %s692_s13, 3 }
  0x58   : > { %v198_v2 = vld [vmem:[%s165_s23 + $0x8] sm:$0xff]  ;;  %200 = vmatprep.subr.mxu0 %v196_v1  ;;  %v197_v4 = vld [vmem:[%s165_s23] sm:$0xff]  ;;  %264 = vmatprep.mubr.f32.mxu0 %v196_v1 }
  0x59   : > { %274 = vmatprep.subr.mxu1 %v198_v2  ;;  %201 = vmatpush1.xpose.msra.mxu0 %v195_v3  ;;  %v199_v5 = vld [vmem:[#allocation2] sm:$0xff]  ;;  %v273_v6 = vld [vmem:[#allocation3] sm:$0xff] }
  0x5a   : > { %275 = vmatpush1.xpose.msra.mxu1 %v197_v4  ;;  %338 = vmatprep.mubr.f32.mxu1 %v198_v2 }
  0x5c   : > { %265 = vmatmul.mubr.f32.vlgmr.msra.gmra.mrb[0].mxu0 %v195_v3 }
  0x5d   : > { %339 = vmatmul.mubr.f32.vlgmr.msra.gmra.mrb[0].mxu1 %v197_v4 }
 0x12d   : > { %349 = sbr.rel (%p473_p8) target bundleno = 688 (0x2b0), region = 44 }
 0x12f   : > { %v266_v7 = vpop.f32.mrb[0].mxu0 }
 0x130   : > { %v340_v8 = vpop.f32.mrb[0].mxu1  ;;  %v270_v9 = vadd.f32 %v266_v7, %v199_v5  ;;  %v268_v11 = vpop.f32.mrb[1].mxu0 }
 0x131   : > { %v344_v10 = vadd.f32 %v340_v8, %v273_v6  ;;  %v342_v12 = vpop.f32.mrb[1].mxu1 }
 0x132   : > { %272 = vst.msk [vmem:[#allocation2] sm:$0xff] %vm271_vm1, %v270_v9 }
 0x133   : > { %345 = vst.msk [vmem:[#allocation3] sm:$0xff] %vm271_vm1, %v344_v10 }
 0x139   : > { %v350_v13 = vld [vmem:[#allocation2] sm:$0xff] }
 0x13a   : > { %v351_v14 = vld [vmem:[#allocation3] sm:$0xff]  ;;  %v352_v15 = vmul.f32 %v350_v13, %v350_v13 }
 0x13b   : > { %v357_v16 = vmul.f32 %v351_v14, %v351_v14 }
 0x13c   : > { %v353_v17 = vsel %vm271_vm1, %v352_v15, 0.0 }
 0x13d   : > { %354 = vadd.xlane.f32.xlu0 %v353_v17  ;;  %v358_v18 = vsel %vm271_vm1, %v357_v16, 0.0 }
 0x141   : > { %359 = vadd.xlane.f32.xlu0 %v358_v18 }
 0x1ca   : > { %v355_v19 = vpop.xlane.xlu0 %354 }
 0x1cb   : > { %534 = vrsqrt.f32 %v355_v19 }
 0x1ce   : > { %v360_v20 = vpop.xlane.xlu0 %359 }
 0x1cf   : > { %536 = vrsqrt.f32 %v360_v20 }
 0x1d5   : > { %v535_v21 = vpop.eup %534 }
 0x1d6   : > { %v362_v23 = vmul.f32 %v535_v21, %v350_v13 }
 0x1d9   : > { %v537_v22 = vpop.eup %536 }
 0x1da   : > { %v363_v24 = vmul.f32 %v537_v22, %v351_v14 }
 0x1dc   : > { %v364_v25 = vsub.f32 %v362_v23, %v363_v24 }
 0x1de   : > { %v365_v26 = vmul.f32 %v364_v25, %v364_v25 }
 0x1e0   : > { %v366_v27 = vsel %vm271_vm1, %v365_v26, 0.0 }
 0x1e1   : > { %367 = vadd.xlane.f32.xlu1 %v366_v27 }
 0x26e   : > { %v368_v28 = vpop.xlane.xlu1 %367 }
 0x26f   : > { %v369_v29 = vrot.slane %v368_v28, 4 }
 0x271   : > { %v370_v30 = vadd.f32 %v369_v29, %v368_v28 }
 0x273   : > { %v371_v31 = vrot.slane %v370_v30, 2 }
 0x275   : > { %v372_v32 = vadd.f32 %v371_v31, %v370_v30 }
 0x277   : > { %v373_v33 = vrot.slane %v372_v32, 1 }
 0x279   : > { %v374_v34 = vadd.f32 %v373_v33, %v372_v32 }
 0x27b   : > { %480 = vpush %v374_v34 }
 0x2ac   : > { %s481_s18 = spop %480 }
 0x2ad   : > { %s378_s27 = smul.f32 0.125, %s481_s18 }
 0x2af   : > { %380 = sst [smem:[#allocation9]] %s378_s27 }
 0x2b0 PF: > { %p498_p5 = scmp.eq.s32.totalorder %s692_s13, 3  ;;  %s598_s29 = scalar_lea.hbm %s844_s2, 16 }
 0x2b1   : > { %p599_p1 = scmp.ne.s32.totalorder %s844_s2, %s598_s29  ;;  %p604_p0 = scmp.lt.u32.totalorder %s598_s29, %s844_s2 }
 0x2b3   : > { %p600_p2 = pnand %p599_p1, %p498_p5 }
 0x2b5   : > { %p601_p3 = pneg %p600_p2 }
 0x2b7   : > { %p606_p4 = pnand %p604_p0, %p601_p3 }
 0x2b9   : > { %609 = shalt.err (!%p606_p4)
}
 0x2ba   : > { %s657_s28 = smov [#allocation9]  }
 0x2bb   : > { %487 = dma.smem_to_hbm (%p498_p5), %s657_s28, 16, %s844_s2, [#allocation6]  }
 0x2bc   : > { %635 = dma.done.wait (%p498_p5), [#allocation6], 16  }
 0x2bd   : > { %637 = vsyncadd (%p498_p5), [#allocation6], 4294967280 }
 0x2be   : > { %394 = sfence }
 0x2bf PF: > { %p16_p9 = scmp.ge.s32.totalorder %s695_s14, 6   ;;  %s853_s9 = smov %s644_s10 }
 0x2c0   : > { %s854_s10 = smov %s648_s11  ;;  %s855_s11 = smov %s705_s17 }
 0x2c1   : > { %s856_s12 = smov %s695_s14  ;;  %18 = sbr.rel (!%p16_p9) target bundleno = 6 (0x6), region = 87 }
 0x2c8   :  { %400 = vsyncpa [#allocation5], 1 }
 0x2c9   :  { %402 = vsyncpa [#allocation5 + $0x1], 1 }
 0x2ca   :  { %403 = vsyncpa [#allocation8], 1 }
 0x2cb   :  { %405 = vsyncpa [#allocation8 + $0x1], 1 }
 0x2cc   :  { %406 = vsyncpa [#allocation6], 1 }
 0x2cd   :  { %408 = vsyncpa [#allocation6 + $0x1], 1 }

</bundles_post_ra>
